<compile_context>
chip_gen: v6e
topology: v6e:2x2x1
jax: 0.10.0
libtpu: 0.0.40
codegen_flags: <defaults>
</compile_context>

<pallas_src>
import math

import jax
import jax.numpy as jnp
from jax.experimental import pallas as pl
from jax.experimental.pallas import tpu as pltpu


def _flatten_kernel(x_ref, o_ref):
    # Pure lane-dense tile copy: (bn, flat) -> (bn, flat).  DMA-bound.
    o_ref[...] = x_ref[...]


def _sublane_tile(itemsize: int) -> int:
    # Sublane packing factor per dtype width (second-to-last block dim must be
    # a multiple of this, or equal to the full array dim).
    return {4: 8, 2: 16, 1: 32}.get(itemsize, 8)


def _auto_batch_block(N: int, row_bytes: int, tile: int) -> int:
    """Pick a batch block: VMEM-budgeted, sublane-aligned, pipeline-friendly."""
    if N <= tile:
        return N  # Can't split further while keeping blocks aligned.

    total_bytes = N * row_bytes
    # Per-buffer budget: 3 MiB each => 4 * block ~ 12 MiB, safe under v5e's
    # 16 MiB scoped-VMEM default (and comfortably under v6e/v7x defaults).
    budget = 3 * 1024 * 1024
    bn = max(tile, (budget // max(row_bytes, 1)) // tile * tile)

    # For large copies, force >= 4 grid steps so the BlockSpec pipeline can
    # overlap in/out DMA (and v7x's 2 TCs both get work); the ~0.35 us/step
    # overhead is negligible at these sizes.  Tiny copies stay single-step.
    if total_bytes >= 4 * 1024 * 1024:
        max_bn_for_steps = pl.cdiv(pl.cdiv(N, 4), tile) * tile
        bn = min(bn, max(tile, max_bn_for_steps))

    bn = min(bn, N)
    if bn == N:
        return bn

    # Prefer a block that divides N so the last grid step is fully dense.
    # (Bounded search; otherwise rely on Pallas clipping the final block.)
    if N % bn:
        cand = bn
        for _ in range(64):
            if cand < tile:
                break
            if N % cand == 0:
                bn = cand
                break
            cand -= tile

    # Safety: block must be sublane-aligned or equal to N.
    if bn % tile and bn != N:
        bn = N
    return bn


def flatten(x, *, batch_block=None, vmem_limit_bytes=None):
    """Pallas TPU implementation of `x.view(x.shape[0], -1)`."""
    if x.ndim < 1:
        raise ValueError("flatten requires at least a batch dimension")
    N = x.shape[0]
    flat = math.prod(x.shape[1:]) if x.ndim > 1 else 1

    # Metadata-only reshape of a contiguous array (no HBM copy): present the
    # input to the kernel already collapsed to (N, flat) so the kernel is a
    # single unconditionally lane-dense vld/vst stream.
    x_in = x.reshape(N, flat)

    itemsize = jnp.dtype(x.dtype).itemsize
    tile = _sublane_tile(itemsize)
    row_bytes = max(flat, 1) * itemsize

    if batch_block is None:
        bn = _auto_batch_block(N, row_bytes, tile)
    else:
        bn = max(1, min(int(batch_block), N))
        # Sanitize user-provided block to satisfy the sublane constraint.
        if bn != N and bn % tile:
            bn = min(N, pl.cdiv(bn, tile) * tile)
            if bn % tile and bn != N:
                bn = N

    # Auto-raise the scoped-VMEM limit only when a single block is forced to
    # be large (e.g. tiny batch, huge per-row width).  Cap with headroom well
    # under v7x's 64 MiB physical VMEM.
    needed = 4 * bn * max(flat, 1) * itemsize  # 2x in + 2x out double-buffers
    if vmem_limit_bytes is None and needed > (12 << 20):
        vmem_limit_bytes = min(int(needed * 5 // 4) + (1 << 20), 48 << 20)

    grid = (pl.cdiv(N, bn),)

    return pl.pallas_call(
        _flatten_kernel,
        out_shape=jax.ShapeDtypeStruct((N, flat), x.dtype),
        grid=grid,
        in_specs=[pl.BlockSpec((bn, flat), lambda n: (n, 0))],
        out_specs=pl.BlockSpec((bn, flat), lambda n: (n, 0)),
        compiler_params=pltpu.CompilerParams(
            dimension_semantics=("parallel",),
            vmem_limit_bytes=vmem_limit_bytes,
        ),
    )(x_in)


if __name__ == "__main__":
    key = jax.random.PRNGKey(0)

    # Shapes consistent with the module's usage: batch=2, C=4, 16x16.
    N, C, H, W = 2, 4, 16, 16
    x = jax.random.normal(key, (N, C, H, W), jnp.float32)

    out = jax.block_until_ready(flatten(x))
    ref = jnp.reshape(x, (N, -1))
    assert out.shape == (N, C * H * W), out.shape
    assert bool(jnp.array_equal(out, ref)), "flatten output mismatch vs reference"

    # Exercise the multi-step pipelined grid path (explicit small batch block).
    x2 = jax.random.normal(jax.random.PRNGKey(1), (32, 8, 8), jnp.float32)
    out2 = jax.block_until_ready(flatten(x2, batch_block=8))
    ref2 = jnp.reshape(x2, (32, -1))
    assert out2.shape == ref2.shape, out2.shape
    assert bool(jnp.array_equal(out2, ref2)), "tiled flatten mismatch vs reference"

    print("KERNEL_OK")
</pallas_src>

<mosaic_0001>
module attributes {stable_mosaic.version = 11 : i64} {
  func.func @_flatten_kernel(%arg0: i32, %arg1: memref<2x1024xf32, #tpu.memory_space<vmem>>, %arg2: memref<2x1024xf32, #tpu.memory_space<vmem>>) attributes {dimension_semantics = [#tpu.dimension_semantics<parallel>], iteration_bounds = array<i64: 1>, scalar_prefetch = 0 : i64, scratch_operands = 0 : i64, tpu.core_type = #tpu.core_type<tc>, window_params = [{transform_indices = @transform_0, window_bounds = array<i64: 2, 1024>}, {transform_indices = @transform_1, window_bounds = array<i64: 2, 1024>}]} {
    %c0 = arith.constant 0 : index
    %c0_0 = arith.constant 0 : index
    %0 = vector.load %arg1[%c0, %c0_0] : memref<2x1024xf32, #tpu.memory_space<vmem>>, vector<2x1024xf32>
    %c0_1 = arith.constant 0 : index
    %c0_2 = arith.constant 0 : index
    %1 = vector.load %arg2[%c0_1, %c0_2] : memref<2x1024xf32, #tpu.memory_space<vmem>>, vector<2x1024xf32>
    tpu.vector_store %arg2[%c0_1, %c0_2], %0 {strides = array<i32>} : memref<2x1024xf32, #tpu.memory_space<vmem>>, vector<2x1024xf32>,
    return
  }
  func.func @transform_0(%arg0: i32) -> (i32, i32) {
    %c0_i32 = arith.constant 0 : i32
    %c0_i32_0 = arith.constant 0 : i32
    return %arg0, %c0_i32 : i32, i32
  }
  func.func @transform_1(%arg0: i32) -> (i32, i32) {
    %c0_i32 = arith.constant 0 : i32
    %c0_i32_0 = arith.constant 0 : i32
    return %arg0, %c0_i32 : i32, i32
  }
}

</mosaic_0001>

<bundles_post_ra>
// kernel: tpu_custom_call.1
= control target key start
LH: loop header
LB: loop body
LE: loop exit
PB: predicated region body
PF: predicated region fallthrough
CT: control target
= control target key end

     0   :  { %6 = vsyncpa [#allocation3], 0  ;;  %s104_s0 = inlined_call_operand.hbm [shape: f32[2,1024], index: 0, kind: input, shape index: {}]   ;;  %s105_s1 = inlined_call_operand.hbm [shape: f32[2,1024], index: 1, kind: output, shape index: {}]  }
   0x1   :  { %7 = vsyncpa [#allocation4], 0  ;;  %s86_s6 = smov [#allocation2]  }
   0x2   :  { %s14_s7 = sshll.u32 %s86_s6, 4  ;;  %s15_s7 = int_to_ptr.vmem [resolvable:$true] %s14_s7 }
   0x3   :  { %s50_s8 = scalar_lea.vmem %s15_s7, 256  ;;  %p55_p1 = scmp.lt.s32.totalorder %s15_s7, %s15_s7 }
   0x4   :  { %p51_p0 = scmp.ne.s32.totalorder %s15_s7, %s50_s8  ;;  %p56_p2 = scmp.lt.s32.totalorder %s50_s8, %s50_s8 }
   0x6   :  { %p57_p3 = por %p56_p2, %p55_p1 }
   0x8   :  { %p58_p4 = pnand %p57_p3, %p51_p0 }
   0xa   :  { %61 = shalt.err (!%p58_p4)
}
   0xb   :  { %17 = dma.hbm_to_vmem [thread:$0]  %s104_s0, 256, %s15_s7, [#allocation3]  }
   0xc   :  { %82 = dma.done.wait [#allocation3], 256  }
   0xd   :  { %83 = vsyncadd [#allocation3], 4294967040  ;;  %s87_s11 = smov [#allocation5]   ;;  %v21_v0 = vld [vmem:[#allocation2] sm:$0xff]  ;;  %v22_v1 = vld [vmem:[#allocation2 + $0x8] sm:$0xff] }
   0xe   :  { %s31_s12 = sshll.u32 %s87_s11, 4  ;;  %23 = vst [vmem:[#allocation5] sm:$0xff] %v21_v0  ;;  %24 = vst [vmem:[#allocation5 + $0x8] sm:$0xff] %v22_v1  ;;  %s32_s12 = int_to_ptr.vmem [resolvable:$true] %s31_s12 }
   0xf   :  { %s62_s13 = scalar_lea.vmem %s32_s12, 256  ;;  %p67_p6 = scmp.lt.s32.totalorder %s32_s12, %s32_s12 }
  0x10   :  { %p63_p5 = scmp.ne.s32.totalorder %s32_s12, %s62_s13  ;;  %p68_p7 = scmp.lt.s32.totalorder %s62_s13, %s62_s13 }
  0x12   :  { %p69_p8 = por %p68_p7, %p67_p6 }
  0x14   :  { %p70_p9 = pnand %p69_p8, %p63_p5 }
  0x16   :  { %73 = shalt.err (!%p70_p9)
}
  0x17   :  { %34 = dma.vmem_to_hbm [thread:$0]  %s32_s12, 256, %s105_s1, [#allocation4]  }
  0x18   :  { %84 = dma.done.wait [#allocation4], 256  }
  0x19   :  { %85 = vsyncadd [#allocation4], 4294967040 }
  0x1a   :  { %38 = vsyncpa [#allocation3], 1 }
  0x1b   :  { %39 = vsyncpa [#allocation4], 1 }

</bundles_post_ra>
